<compile_context>
chip_gen: v5e
topology: v5e:2x2
jax: 0.10.0
libtpu: 0.0.40
codegen_flags: <defaults>
</compile_context>

<pallas_src>
import math

import jax
import jax.numpy as jnp
from jax.experimental import pallas as pl
from jax.experimental.pallas import tpu as pltpu


# ---- reducer configuration (deterministic, in-script) ----------------------
STEP_TIME = 1.0      # dt
DURATION = 4.0       # history length in units of dt
INCLUSIVE = False
FILL = 0.0
ALPHA = 0.3          # EMA fold coefficient

# number of stored observations in the RecordTensor ring buffer
RECORDSZ = max(1, int(DURATION / STEP_TIME) + (1 if INCLUSIVE else 0))


def _is_dual_tensorcore():
    """Best-effort check for dual-TensorCore chips (v7x-style megacore)."""
    try:
        kind = jax.devices()[0].device_kind.lower()
    except Exception:
        return False
    return ("v7" in kind) or ("7x" in kind)


def _make_kernel(*, T, TT, recordsz, n_time_blocks, alpha, fill):
    """Build the FoldReducer kernel for a fixed (static) configuration."""
    keep = min(T, recordsz)                        # only the last `keep` states survive
    first_kept = T - keep                          # first surviving global step
    last_valid = T - (n_time_blocks - 1) * TT      # valid steps in the final block
    masked_tail = last_valid != TT                 # implies n_time_blocks >= 2
    need_fill = T < recordsz                       # some ring slots keep the fill value

    def kernel(x_ref, rec_ref, latest_ref):
        # x_ref:      (TT, S, TL)        TT observations, dense (8,128) slabs
        # rec_ref:    (RECORDSZ, S, TL)  circular record, resident over the time axis
        # latest_ref: (1, S, TL)         peek() / running fold state, resident
        t = pl.program_id(1)                       # time-block index (sequential)

        if need_fill:
            # only needed when some ring slots are never overwritten (T < RECORDSZ)
            @pl.when(t == 0)
            def _():
                rec_ref[...] = jnp.full(rec_ref.shape, fill, rec_ref.dtype)

        # Seed fold(x_0, None) = x_0 so the carry read below never touches
        # uninitialized output VMEM.
        @pl.when(t == 0)
        def _():
            latest_ref[0] = x_ref[0].astype(jnp.float32)

        prev = latest_ref[0]                       # (S, TL) carry from previous block

        # Fully unrolled in-vreg EMA recurrence; x is loaded/cast per step so
        # only ~2 slabs stay live (no block-wide f32 temp).
        state = prev
        carry_last = prev
        for s in range(TT):
            x_s = x_ref[s].astype(jnp.float32)
            folded = alpha * x_s + (1.0 - alpha) * state
            if s == 0:
                # first observation of the whole sequence: state = seed (== prev)
                folded = jnp.where(t == 0, prev, folded)
            state = folded

            # Ring-buffer stores, dead-store eliminated: a state survives in
            # `data_` only if its global step is in [T - keep, T). The owning
            # block and slot are Python constants -> full-tile unmasked stores,
            # no runtime modulo, and no stores at all in steady-state blocks.
            for tb in range(n_time_blocks):
                g = tb * TT + s
                if first_kept <= g < T:
                    @pl.when(t == tb)
                    def _(v=state, slot=g % recordsz):
                        rec_ref[slot] = v

            if masked_tail and s == last_valid - 1:
                carry_last = state                 # last *valid* state of final block

        # Carry for the next block / final peek(); padded steps never reach it.
        if masked_tail:
            @pl.when(t == n_time_blocks - 1)
            def _():
                latest_ref[0] = carry_last

            @pl.when(t < n_time_blocks - 1)
            def _():
                latest_ref[0] = state
        else:
            latest_ref[0] = state

    return kernel


def fold_reducer_forward(x_seq, *, record_size=RECORDSZ, alpha=ALPHA, fill=FILL,
                         tt_max=64, block_byte_target=8 << 20,
                         num_feature_blocks=None):
    """Run FoldReducer.forward() over a sequence of observations.

    Args:
        x_seq: [T, *obs_shape] observation sequence (f32 or bf16; folded in f32).
        tt_max: max timesteps processed (fully unrolled) per grid step.
        block_byte_target: target bytes per streamed input block.
        num_feature_blocks: lane blocks for the parallel axis (None = auto).

    Returns:
        record: [record_size, *obs_shape] the reducer's `data` storage tensor
                (unordered circular buffer, fill-initialized).
        latest: [*obs_shape] the reducer's current state (peek()/latest).
    """
    T = int(x_seq.shape[0])
    if T == 0:
        raise ValueError("fold_reducer_forward requires at least one observation")
    obs_shape = x_seq.shape[1:]
    BN = math.prod(obs_shape) if obs_shape else 1

    # Dense (8,128)-tiled layout: flatten the observation dims, pad to a whole
    # number of vregs, and view each observation as an (S=8, L) slab so the EMA
    # and all record/latest writes use full, unmasked vregs.
    S = 8
    BN_pad = -(-BN // (S * 128)) * (S * 128)
    x2 = x_seq.reshape(T, BN)
    if BN_pad != BN:
        x2 = jnp.pad(x2, ((0, 0), (0, BN_pad - BN)))
    L = BN_pad // S
    x3 = x2.reshape(T, S, L)
    nlanes = L // 128

    # Feature (lane) blocks: 2 on dual-TensorCore chips (one block per core via
    # the leading "parallel" grid axis), otherwise 1. Additionally split so the
    # carried state slab stays within ~16 f32 vregs (keeps the carry in registers).
    if num_feature_blocks is None:
        nfb = 2 if (_is_dual_tensorcore() and nlanes % 2 == 0) else 1
    else:
        nfb = max(1, int(num_feature_blocks))
    target_state_elems = 16 * 1024
    while nfb < nlanes and (S * L) // nfb > target_state_elems:
        nfb += 1
    while nlanes % nfb != 0:                       # must split the lane dim evenly
        nfb += 1
    nfb = min(nfb, nlanes)
    TL = L // nfb

    # Timesteps per grid step: amortize the ~0.35 us per-step overhead with a
    # large streamed block, but bound the unrolled recurrence to tt_max steps.
    itemsize = jnp.dtype(x_seq.dtype).itemsize
    if T <= tt_max:
        TT = T                                     # single full-extent block
    else:
        cap = max(1, block_byte_target // (itemsize * S * TL))
        TT = max(1, min(tt_max, cap))
    n_time_blocks = -(-T // TT)
    T_pad = n_time_blocks * TT
    if T_pad != T:
        x3 = jnp.pad(x3, ((0, T_pad - T), (0, 0), (0, 0)))

    kernel = _make_kernel(T=T, TT=TT, recordsz=record_size,
                          n_time_blocks=n_time_blocks,
                          alpha=float(alpha), fill=float(fill))

    out_shapes = (
        jax.ShapeDtypeStruct((record_size, S, L), jnp.float32),
        jax.ShapeDtypeStruct((1, S, L), jnp.float32),
    )
    grid_spec = pltpu.PrefetchScalarGridSpec(
        num_scalar_prefetch=0,
        grid=(nfb, n_time_blocks),                 # time axis last (sequential carry)
        in_specs=[pl.BlockSpec((TT, S, TL), lambda n, t: (t, 0, n))],
        out_specs=[
            pl.BlockSpec((record_size, S, TL), lambda n, t: (0, 0, n)),  # resident
            pl.BlockSpec((1, S, TL), lambda n, t: (0, 0, n)),            # resident
        ],
    )

    # VMEM budget from the real footprint (input itemsize aware): double-buffered
    # input stream + resident record/latest + headroom; never request the full
    # physical VMEM (v7x has 64 MiB per TensorCore).
    in_block = itemsize * TT * S * TL
    resident = 4 * S * TL * (record_size + 1)
    footprint = 2 * in_block + 2 * resident
    vmem_bytes = int(min(max(footprint + (4 << 20), 8 << 20), 48 << 20))

    record, latest = pl.pallas_call(
        kernel,
        out_shape=out_shapes,
        grid_spec=grid_spec,
        compiler_params=pltpu.CompilerParams(
            dimension_semantics=("parallel", "arbitrary"),
            vmem_limit_bytes=vmem_bytes,
        ),
    )(x3)

    record = record.reshape(record_size, BN_pad)[:, :BN]
    latest = latest.reshape(BN_pad)[:BN]
    return (record.reshape((record_size,) + tuple(obs_shape)),
            latest.reshape(tuple(obs_shape)))


def _reference_forward(x_seq, record_size=RECORDSZ, alpha=ALPHA, fill=FILL):
    """Pure-JAX reference of the same FoldReducer.forward() sequence."""
    T = x_seq.shape[0]
    rec = jnp.full((record_size,) + x_seq.shape[1:], fill, jnp.float32)
    state = x_seq[0].astype(jnp.float32)
    rec = rec.at[0].set(state)
    for t in range(1, T):
        state = alpha * x_seq[t].astype(jnp.float32) + (1.0 - alpha) * state
        rec = rec.at[t % record_size].set(state)
    return rec, state


if __name__ == "__main__":
    key = jax.random.PRNGKey(0)
    k1, k2 = jax.random.split(key)

    # Case 1: multi-block sequential carry + ragged last time block (T % TT != 0),
    # T >= RECORDSZ so every ring slot is overwritten (no fill needed).
    T1, B1, N1 = 21, 8, 128
    x1 = jax.random.normal(k1, (T1, B1, N1), dtype=jnp.float32)
    rec1, last1 = fold_reducer_forward(x1, tt_max=8)
    rec1, last1 = jax.block_until_ready((rec1, last1))
    rec1_ref, last1_ref = _reference_forward(x1)
    assert rec1.shape == (RECORDSZ, B1, N1) and last1.shape == (B1, N1)
    assert jnp.allclose(rec1, rec1_ref, atol=1e-5, rtol=1e-5), "record mismatch (case 1)"
    assert jnp.allclose(last1, last1_ref, atol=1e-5, rtol=1e-5), "latest mismatch (case 1)"

    # Case 2: T < RECORDSZ (fill path) and a feature size that is not a whole
    # number of vregs (exercises the lane-padding path).
    T2 = 3
    obs2 = (2, 4, 48)
    x2 = jax.random.normal(k2, (T2,) + obs2, dtype=jnp.float32)
    rec2, last2 = fold_reducer_forward(x2)
    rec2, last2 = jax.block_until_ready((rec2, last2))
    rec2_ref, last2_ref = _reference_forward(x2)
    assert rec2.shape == (RECORDSZ,) + obs2 and last2.shape == obs2
    assert jnp.allclose(rec2, rec2_ref, atol=1e-5, rtol=1e-5), "record mismatch (case 2)"
    assert jnp.allclose(last2, last2_ref, atol=1e-5, rtol=1e-5), "latest mismatch (case 2)"

    # dump() (time-ordered, most recent first) is plain-JAX glue over the record.
    # TODO(synk): view()/interpolate() (time-interpolated select) is abstract in
    # the module and left to plain JAX outside the kernel.
    last_slot = (T1 - 1) % RECORDSZ
    order = (last_slot - jnp.arange(min(T1, RECORDSZ))) % RECORDSZ
    _dump = jnp.take(rec1, order, axis=0)  # noqa: F841  (most-recent-first view)

    print("KERNEL_OK")
</pallas_src>

<mosaic_0001>
module attributes {stable_mosaic.version = 11 : i64} {
  func.func @kernel(%arg0: i32, %arg1: i32, %arg2: memref<8x8x128xf32, #tpu.memory_space<vmem>>, %arg3: memref<4x8x128xf32, #tpu.memory_space<vmem>>, %arg4: memref<1x8x128xf32, #tpu.memory_space<vmem>>) attributes {dimension_semantics = [#tpu.dimension_semantics<parallel>, #tpu.dimension_semantics<arbitrary>], iteration_bounds = array<i64: 1, 3>, scalar_prefetch = 0 : i64, scratch_operands = 0 : i64, tpu.core_type = #tpu.core_type<tc>, window_params = [{transform_indices = @transform_0, window_bounds = array<i64: 8, 8, 128>}, {transform_indices = @transform_1, window_bounds = array<i64: 4, 8, 128>}, {transform_indices = @transform_2, window_bounds = array<i64: 1, 8, 128>}]} {
    %c0_i32 = arith.constant 0 : i32
    %0 = arith.cmpi eq, %arg1, %c0_i32 : i32
    %1 = arith.extui %0 : i1 to i32
    %c0_i32_0 = arith.constant 0 : i32
    %2 = arith.cmpi ne, %1, %c0_i32_0 : i32
    scf.if %2 {
      %c0_47 = arith.constant 0 : index
      %c0_48 = arith.constant 0 : index
      %c0_49 = arith.constant 0 : index
      %81 = vector.load %arg2[%c0_47, %c0_48, %c0_49] : memref<8x8x128xf32, #tpu.memory_space<vmem>>, vector<1x8x128xf32>
      %82 = vector.shape_cast %81 : vector<1x8x128xf32> to vector<8x128xf32>
      %c0_50 = arith.constant 0 : index
      %c0_51 = arith.constant 0 : index
      %c0_52 = arith.constant 0 : index
      %83 = vector.load %arg4[%c0_50, %c0_51, %c0_52] : memref<1x8x128xf32, #tpu.memory_space<vmem>>, vector<1x8x128xf32>
      %84 = vector.shape_cast %83 : vector<1x8x128xf32> to vector<8x128xf32>
      %85 = vector.shape_cast %82 : vector<8x128xf32> to vector<1x8x128xf32>
      tpu.vector_store %arg4[%c0_50, %c0_51, %c0_52], %85 {strides = array<i32>} : memref<1x8x128xf32, #tpu.memory_space<vmem>>, vector<1x8x128xf32>,
    } else {
    }
    %c0 = arith.constant 0 : index
    %c0_1 = arith.constant 0 : index
    %c0_2 = arith.constant 0 : index
    %3 = vector.load %arg4[%c0, %c0_1, %c0_2] : memref<1x8x128xf32, #tpu.memory_space<vmem>>, vector<1x8x128xf32>
    %4 = vector.shape_cast %3 : vector<1x8x128xf32> to vector<8x128xf32>
    %c0_3 = arith.constant 0 : index
    %c0_4 = arith.constant 0 : index
    %c0_5 = arith.constant 0 : index
    %5 = vector.load %arg2[%c0_3, %c0_4, %c0_5] : memref<8x8x128xf32, #tpu.memory_space<vmem>>, vector<1x8x128xf32>
    %6 = vector.shape_cast %5 : vector<1x8x128xf32> to vector<8x128xf32>
    %cst = arith.constant 3.000000e-01 : f32
    %7 = vector.broadcast %cst : f32 to vector<8x128xf32>
    %8 = arith.mulf %7, %6 : vector<8x128xf32>
    %cst_6 = arith.constant 0.699999988 : f32
    %9 = vector.broadcast %cst_6 : f32 to vector<8x128xf32>
    %10 = arith.mulf %9, %4 : vector<8x128xf32>
    %11 = arith.addf %8, %10 : vector<8x128xf32>
    %c0_i32_7 = arith.constant 0 : i32
    %12 = arith.cmpi eq, %arg1, %c0_i32_7 : i32
    %13 = arith.select %12, %4, %11 : vector<8x128xf32>
    %c1 = arith.constant 1 : index
    %c0_8 = arith.constant 0 : index
    %c0_9 = arith.constant 0 : index
    %14 = vector.load %arg2[%c1, %c0_8, %c0_9] : memref<8x8x128xf32, #tpu.memory_space<vmem>>, vector<1x8x128xf32>
    %15 = vector.shape_cast %14 : vector<1x8x128xf32> to vector<8x128xf32>
    %cst_10 = arith.constant 3.000000e-01 : f32
    %16 = vector.broadcast %cst_10 : f32 to vector<8x128xf32>
    %17 = arith.mulf %16, %15 : vector<8x128xf32>
    %cst_11 = arith.constant 0.699999988 : f32
    %18 = vector.broadcast %cst_11 : f32 to vector<8x128xf32>
    %19 = arith.mulf %18, %13 : vector<8x128xf32>
    %20 = arith.addf %17, %19 : vector<8x128xf32>
    %c2_i32 = arith.constant 2 : i32
    %21 = arith.cmpi eq, %arg1, %c2_i32 : i32
    %22 = arith.extui %21 : i1 to i32
    %c0_i32_12 = arith.constant 0 : i32
    %23 = arith.cmpi ne, %22, %c0_i32_12 : i32
    scf.if %23 {
      %c1_47 = arith.constant 1 : index
      %c0_48 = arith.constant 0 : index
      %c0_49 = arith.constant 0 : index
      %81 = vector.load %arg3[%c1_47, %c0_48, %c0_49] : memref<4x8x128xf32, #tpu.memory_space<vmem>>, vector<1x8x128xf32>
      %82 = vector.shape_cast %81 : vector<1x8x128xf32> to vector<8x128xf32>
      %83 = vector.shape_cast %20 : vector<8x128xf32> to vector<1x8x128xf32>
      tpu.vector_store %arg3[%c1_47, %c0_48, %c0_49], %83 {strides = array<i32>} : memref<4x8x128xf32, #tpu.memory_space<vmem>>, vector<1x8x128xf32>,
    } else {
    }
    %c2 = arith.constant 2 : index
    %c0_13 = arith.constant 0 : index
    %c0_14 = arith.constant 0 : index
    %24 = vector.load %arg2[%c2, %c0_13, %c0_14] : memref<8x8x128xf32, #tpu.memory_space<vmem>>, vector<1x8x128xf32>
    %25 = vector.shape_cast %24 : vector<1x8x128xf32> to vector<8x128xf32>
    %cst_15 = arith.constant 3.000000e-01 : f32
    %26 = vector.broadcast %cst_15 : f32 to vector<8x128xf32>
    %27 = arith.mulf %26, %25 : vector<8x128xf32>
    %cst_16 = arith.constant 0.699999988 : f32
    %28 = vector.broadcast %cst_16 : f32 to vector<8x128xf32>
    %29 = arith.mulf %28, %20 : vector<8x128xf32>
    %30 = arith.addf %27, %29 : vector<8x128xf32>
    %c2_i32_17 = arith.constant 2 : i32
    %31 = arith.cmpi eq, %arg1, %c2_i32_17 : i32
    %32 = arith.extui %31 : i1 to i32
    %c0_i32_18 = arith.constant 0 : i32
    %33 = arith.cmpi ne, %32, %c0_i32_18 : i32
    scf.if %33 {
      %c2_47 = arith.constant 2 : index
      %c0_48 = arith.constant 0 : index
      %c0_49 = arith.constant 0 : index
      %81 = vector.load %arg3[%c2_47, %c0_48, %c0_49] : memref<4x8x128xf32, #tpu.memory_space<vmem>>, vector<1x8x128xf32>
      %82 = vector.shape_cast %81 : vector<1x8x128xf32> to vector<8x128xf32>
      %83 = vector.shape_cast %30 : vector<8x128xf32> to vector<1x8x128xf32>
      tpu.vector_store %arg3[%c2_47, %c0_48, %c0_49], %83 {strides = array<i32>} : memref<4x8x128xf32, #tpu.memory_space<vmem>>, vector<1x8x128xf32>,
    } else {
    }
    %c3 = arith.constant 3 : index
    %c0_19 = arith.constant 0 : index
    %c0_20 = arith.constant 0 : index
    %34 = vector.load %arg2[%c3, %c0_19, %c0_20] : memref<8x8x128xf32, #tpu.memory_space<vmem>>, vector<1x8x128xf32>
    %35 = vector.shape_cast %34 : vector<1x8x128xf32> to vector<8x128xf32>
    %cst_21 = arith.constant 3.000000e-01 : f32
    %36 = vector.broadcast %cst_21 : f32 to vector<8x128xf32>
    %37 = arith.mulf %36, %35 : vector<8x128xf32>
    %cst_22 = arith.constant 0.699999988 : f32
    %38 = vector.broadcast %cst_22 : f32 to vector<8x128xf32>
    %39 = arith.mulf %38, %30 : vector<8x128xf32>
    %40 = arith.addf %37, %39 : vector<8x128xf32>
    %c2_i32_23 = arith.constant 2 : i32
    %41 = arith.cmpi eq, %arg1, %c2_i32_23 : i32
    %42 = arith.extui %41 : i1 to i32
    %c0_i32_24 = arith.constant 0 : i32
    %43 = arith.cmpi ne, %42, %c0_i32_24 : i32
    scf.if %43 {
      %c3_47 = arith.constant 3 : index
      %c0_48 = arith.constant 0 : index
      %c0_49 = arith.constant 0 : index
      %81 = vector.load %arg3[%c3_47, %c0_48, %c0_49] : memref<4x8x128xf32, #tpu.memory_space<vmem>>, vector<1x8x128xf32>
      %82 = vector.shape_cast %81 : vector<1x8x128xf32> to vector<8x128xf32>
      %83 = vector.shape_cast %40 : vector<8x128xf32> to vector<1x8x128xf32>
      tpu.vector_store %arg3[%c3_47, %c0_48, %c0_49], %83 {strides = array<i32>} : memref<4x8x128xf32, #tpu.memory_space<vmem>>, vector<1x8x128xf32>,
    } else {
    }
    %c4 = arith.constant 4 : index
    %c0_25 = arith.constant 0 : index
    %c0_26 = arith.constant 0 : index
    %44 = vector.load %arg2[%c4, %c0_25, %c0_26] : memref<8x8x128xf32, #tpu.memory_space<vmem>>, vector<1x8x128xf32>
    %45 = vector.shape_cast %44 : vector<1x8x128xf32> to vector<8x128xf32>
    %cst_27 = arith.constant 3.000000e-01 : f32
    %46 = vector.broadcast %cst_27 : f32 to vector<8x128xf32>
    %47 = arith.mulf %46, %45 : vector<8x128xf32>
    %cst_28 = arith.constant 0.699999988 : f32
    %48 = vector.broadcast %cst_28 : f32 to vector<8x128xf32>
    %49 = arith.mulf %48, %40 : vector<8x128xf32>
    %50 = arith.addf %47, %49 : vector<8x128xf32>
    %c2_i32_29 = arith.constant 2 : i32
    %51 = arith.cmpi eq, %arg1, %c2_i32_29 : i32
    %52 = arith.extui %51 : i1 to i32
    %c0_i32_30 = arith.constant 0 : i32
    %53 = arith.cmpi ne, %52, %c0_i32_30 : i32
    scf.if %53 {
      %c0_47 = arith.constant 0 : index
      %c0_48 = arith.constant 0 : index
      %c0_49 = arith.constant 0 : index
      %81 = vector.load %arg3[%c0_47, %c0_48, %c0_49] : memref<4x8x128xf32, #tpu.memory_space<vmem>>, vector<1x8x128xf32>
      %82 = vector.shape_cast %81 : vector<1x8x128xf32> to vector<8x128xf32>
      %83 = vector.shape_cast %50 : vector<8x128xf32> to vector<1x8x128xf32>
      tpu.vector_store %arg3[%c0_47, %c0_48, %c0_49], %83 {strides = array<i32>} : memref<4x8x128xf32, #tpu.memory_space<vmem>>, vector<1x8x128xf32>,
    } else {
    }
    %c5 = arith.constant 5 : index
    %c0_31 = arith.constant 0 : index
    %c0_32 = arith.constant 0 : index
    %54 = vector.load %arg2[%c5, %c0_31, %c0_32] : memref<8x8x128xf32, #tpu.memory_space<vmem>>, vector<1x8x128xf32>
    %55 = vector.shape_cast %54 : vector<1x8x128xf32> to vector<8x128xf32>
    %cst_33 = arith.constant 3.000000e-01 : f32
    %56 = vector.broadcast %cst_33 : f32 to vector<8x128xf32>
    %57 = arith.mulf %56, %55 : vector<8x128xf32>
    %cst_34 = arith.constant 0.699999988 : f32
    %58 = vector.broadcast %cst_34 : f32 to vector<8x128xf32>
    %59 = arith.mulf %58, %50 : vector<8x128xf32>
    %60 = arith.addf %57, %59 : vector<8x128xf32>
    %c6 = arith.constant 6 : index
    %c0_35 = arith.constant 0 : index
    %c0_36 = arith.constant 0 : index
    %61 = vector.load %arg2[%c6, %c0_35, %c0_36] : memref<8x8x128xf32, #tpu.memory_space<vmem>>, vector<1x8x128xf32>
    %62 = vector.shape_cast %61 : vector<1x8x128xf32> to vector<8x128xf32>
    %cst_37 = arith.constant 3.000000e-01 : f32
    %63 = vector.broadcast %cst_37 : f32 to vector<8x128xf32>
    %64 = arith.mulf %63, %62 : vector<8x128xf32>
    %cst_38 = arith.constant 0.699999988 : f32
    %65 = vector.broadcast %cst_38 : f32 to vector<8x128xf32>
    %66 = arith.mulf %65, %60 : vector<8x128xf32>
    %67 = arith.addf %64, %66 : vector<8x128xf32>
    %c7 = arith.constant 7 : index
    %c0_39 = arith.constant 0 : index
    %c0_40 = arith.constant 0 : index
    %68 = vector.load %arg2[%c7, %c0_39, %c0_40] : memref<8x8x128xf32, #tpu.memory_space<vmem>>, vector<1x8x128xf32>
    %69 = vector.shape_cast %68 : vector<1x8x128xf32> to vector<8x128xf32>
    %cst_41 = arith.constant 3.000000e-01 : f32
    %70 = vector.broadcast %cst_41 : f32 to vector<8x128xf32>
    %71 = arith.mulf %70, %69 : vector<8x128xf32>
    %cst_42 = arith.constant 0.699999988 : f32
    %72 = vector.broadcast %cst_42 : f32 to vector<8x128xf32>
    %73 = arith.mulf %72, %67 : vector<8x128xf32>
    %74 = arith.addf %71, %73 : vector<8x128xf32>
    %c2_i32_43 = arith.constant 2 : i32
    %75 = arith.cmpi eq, %arg1, %c2_i32_43 : i32
    %76 = arith.extui %75 : i1 to i32
    %c0_i32_44 = arith.constant 0 : i32
    %77 = arith.cmpi ne, %76, %c0_i32_44 : i32
    scf.if %77 {
      %c0_47 = arith.constant 0 : index
      %c0_48 = arith.constant 0 : index
      %c0_49 = arith.constant 0 : index
      %81 = vector.load %arg4[%c0_47, %c0_48, %c0_49] : memref<1x8x128xf32, #tpu.memory_space<vmem>>, vector<1x8x128xf32>
      %82 = vector.shape_cast %81 : vector<1x8x128xf32> to vector<8x128xf32>
      %83 = vector.shape_cast %50 : vector<8x128xf32> to vector<1x8x128xf32>
      tpu.vector_store %arg4[%c0_47, %c0_48, %c0_49], %83 {strides = array<i32>} : memref<1x8x128xf32, #tpu.memory_space<vmem>>, vector<1x8x128xf32>,
    } else {
    }
    %c2_i32_45 = arith.constant 2 : i32
    %78 = arith.cmpi slt, %arg1, %c2_i32_45 : i32
    %79 = arith.extui %78 : i1 to i32
    %c0_i32_46 = arith.constant 0 : i32
    %80 = arith.cmpi ne, %79, %c0_i32_46 : i32
    scf.if %80 {
      %c0_47 = arith.constant 0 : index
      %c0_48 = arith.constant 0 : index
      %c0_49 = arith.constant 0 : index
      %81 = vector.load %arg4[%c0_47, %c0_48, %c0_49] : memref<1x8x128xf32, #tpu.memory_space<vmem>>, vector<1x8x128xf32>
      %82 = vector.shape_cast %81 : vector<1x8x128xf32> to vector<8x128xf32>
      %83 = vector.shape_cast %74 : vector<8x128xf32> to vector<1x8x128xf32>
      tpu.vector_store %arg4[%c0_47, %c0_48, %c0_49], %83 {strides = array<i32>} : memref<1x8x128xf32, #tpu.memory_space<vmem>>, vector<1x8x128xf32>,
    } else {
    }
    return
  }
  func.func @transform_0(%arg0: i32, %arg1: i32) -> (i32, i32, i32) {
    %c0_i32 = arith.constant 0 : i32
    %c0_i32_0 = arith.constant 0 : i32
    return %arg1, %c0_i32, %arg0 : i32, i32, i32
  }
  func.func @transform_1(%arg0: i32, %arg1: i32) -> (i32, i32, i32) {
    %c0_i32 = arith.constant 0 : i32
    %c0_i32_0 = arith.constant 0 : i32
    %c0_i32_1 = arith.constant 0 : i32
    return %c0_i32, %c0_i32_0, %arg0 : i32, i32, i32
  }
  func.func @transform_2(%arg0: i32, %arg1: i32) -> (i32, i32, i32) {
    %c0_i32 = arith.constant 0 : i32
    %c0_i32_0 = arith.constant 0 : i32
    %c0_i32_1 = arith.constant 0 : i32
    return %c0_i32, %c0_i32_0, %arg0 : i32, i32, i32
  }
}

</mosaic_0001>

<bundles_post_ra>
// kernel: tpu_custom_call.1
= control target key start
LH: loop header
LB: loop body
LE: loop exit
PB: predicated region body
PF: predicated region fallthrough
CT: control target
= control target key end

     0   :  { %8 = vsyncpa [#allocation3], 0  ;;  %s763_s0 = inlined_call_operand.hbm [shape: f32[24,8,128], index: 0, kind: input, shape index: {}]   ;;  %s764_s1 = inlined_call_operand.hbm [shape: f32[4,8,128], index: 1, kind: output, shape index: {0}]   ;;  %s765_s2 = inlined_call_operand.hbm [shape: f32[1,8,128], index: 2, kind: output, shape index: {1}]  }
   0x1   :  { %10 = vsyncpa [#allocation3 + $0x1], 0 }
   0x2   :  { %11 = vsyncpa [#allocation4], 0 }
   0x3   :  { %12 = vsyncpa [#allocation7], 0  ;;  %s629_s9 = smov 0   ;;  %s631_s10 = smov 0  }
   0x4   :  { %s633_s11 = smov 0   ;;  %s635_s12 = smov 0  }
   0x5   :  { %s637_s13 = smov 0   ;;  %s639_s14 = smov 0  }
   0x6 LB: > { %s360_s15 = sadd.s32 4294967295, %s606_s14   ;;  %s27_s16 = sadd.s32 1, %s602_s13  ;;  %s606_s14 = sphi %s639_s14, %s18_s14   ;;  %s602_s13 = sphi %s637_s13, %s773_s13   ;;  %s598_s12 = sphi %s635_s12, %s772_s12   ;;  %s594_s11 = sphi %s633_s11, %s771_s11   ;;  %s590_s10 = sphi %s631_s10, %s770_s10   ;;  %s586_s9 = sphi %s629_s9, %s769_s9  }
   0x7   : > { %p28_p0 = scmp.ge.s32.totalorder %s27_s16, 3  ;;  %s39_s17 = sadd.s32 1, %s594_s11 }
   0x8   : > { %p46_p1 = scmp.ne.s32.totalorder %s594_s11, %s590_s10  ;;  %p47_p2 = scmp.eq.s32.totalorder %s606_s14, 0 }
   0x9   : > { %s775_s16 = smov (%p28_p0, %s27_s16), 0  ;;  %p52_p4 = scmp.ne.s32.totalorder %s590_s10, %s586_s9 }
   0xa   : > { %p665_p3 = por %p47_p2, %p46_p1  ;;  %s34_s19 = ssub.s32 %s602_s13, %s775_s16 }
   0xb   : > { %p53_p5 = scmp.eq.s32.totalorder %s360_s15, 0  ;;  %p37_p6 = scmp.eq.s32.totalorder %s34_s19, 0 }
   0xc   : > { %p403_p8 = scmp.lt.s32.totalorder %s606_s14, 3  ;;  %s128_s22 = sand.u32 1, %s594_s11  }
   0xd   : > { %p674_p7 = por %p53_p5, %p52_p4  ;;  %s388_s23 = sshll.u32 %s602_s13, 6 }
   0xe   : > { %s680_s21 = scalar_select %p37_p6, %s594_s11, %s39_s17  }
   0xf   : > { %s363_s24 = sshll.u32 %s128_s22, 6  ;;  %s138_s27 = scalar_lea.hbm %s763_s0, %s388_s23 }
  0x10   : > { %s139_s28 = sshll.u32 %s138_s27, 4  ;;  %s132_s29 = scalar_lea.vmem [#allocation2], %s363_s24  ;;  %s140_s28 = int_to_ptr.hbm [resolvable:$true] %s139_s28 }
  0x11   : > { %s141_s30 = sshll.u32 %s132_s29, 4  ;;  %p400_p9 = pnand %p403_p8, %p665_p3  ;;  %s142_s30 = int_to_ptr.vmem [resolvable:$true] %s141_s30 }
  0x12   : > { %p366_p10 = scmp.ge.s32.totalorder %s606_s14, 1  ;;  %p149_p11 = scmp.lt.s32.totalorder %s606_s14, 4 }
  0x13   : > { %s129_s3 = scalar_lea.sflag [#allocation3], %s128_s22  ;;  %s608_s4 = smov 128  }
  0x14   : > { %s609_s5 = smov 8   ;;  %p150_p12 = pnand %p366_p10, %p149_p11 }
  0x15   : > { %402 = dma.hbm_to_vmem [thread:$0]  (!%p400_p9), %s140_s28, 1024, %s142_s30, %s129_s3, %s608_s4, %s608_s4, %s609_s5  }
  0x16   : > { %153 = sbr.rel (%p150_p12) target bundleno = 104 (0x68), region = 24  ;;  %s155_s6 = sand.u32 (!%p150_p12), 1, %s590_s10  }
  0x17   : > { %s367_s7 = sshll.u32 (!%p150_p12), %s155_s6, 6  ;;  %s156_s8 = scalar_lea.sflag (!%p150_p12), [#allocation3], %s155_s6 }
  0x18   : > { %s692_s9 = scalar_lea.vmem (!%p150_p12), [#allocation2], %s367_s7 }
  0x1b   : > { %573 = dma.done.wait (%p674_p7), %s156_s8, 1024  }
  0x1c   : > { %575 = vsyncadd (%p674_p7), %s156_s8, 4294966272  ;;  %p177_p13 = scmp.eq.s32.totalorder %s598_s12, 0  ;;  %p368_p0 = scmp.ne.s32.totalorder %s598_s12, 0 }
  0x1e   : > { %180 = sbr.rel (%p368_p0) target bundleno = 37 (0x25), region = 32 }
  0x23   : > { %v181_v0 = vld [vmem:[%s692_s9] sm:$0xff] }
  0x24   : > { %182 = vst [vmem:[#allocation6] sm:$0xff] %v181_v0 }
  0x25 PF: > { %v184_v2 = vld [vmem:[%s692_s9] sm:$0xff]  ;;  %s188_s17 = scalar_select %p177_p13, 1, 0  ;;  %v369_v5 = vld [vmem:[%s692_s9 + $0x8] sm:$0xff] }
  0x26   : > { %v185_v3 = vmul.f32 0.3, %v184_v2  ;;  %v194_v8 = vmul.f32 0.3, %v369_v5  ;;  %p370_p1 = scmp.ne.s32.totalorder %s598_s12, 2 }
  0x27   : > { %v189_v6 = vstv %s188_s17 }
  0x28   : > { %vm190_vm0 = vcmp.eq.s32.totalorder %v189_v6, 1 }
  0x2b   : > { %v183_v1 = vld [vmem:[#allocation6] sm:$0xff] }
  0x2c   : > { %v186_v4 = vmul.f32 0.7, %v183_v1 }
  0x2e   : > { %v187_v7 = vadd.f32 %v186_v4, %v185_v3 }
  0x2f   : > { %200 = sbr.rel (%p370_p1) target bundleno = 54 (0x36), region = 36 }
  0x30   : > { %v191_v9 = vsel %vm190_vm0, %v183_v1, %v187_v7 }
  0x31   : > { %v195_v10 = vmul.f32 0.7, %v191_v9 }
  0x33   : > { %v196_v11 = vadd.f32 %v195_v10, %v194_v8 }
  0x35   : > { %202 = vst [vmem:[#allocation5 + $0x8] sm:$0xff] %v196_v11 }
  0x36 PF: > { %v371_v12 = vld [vmem:[%s692_s9 + $0x10] sm:$0xff]  ;;  %v206_v13 = vmul.f32 0.7, %v196_v11  ;;  %210 = sbr.rel (%p370_p1) target bundleno = 60 (0x3c), region = 40 }
  0x37   : > { %v205_v14 = vmul.f32 0.3, %v371_v12 }
  0x39   : > { %v207_v15 = vadd.f32 %v206_v13, %v205_v14 }
  0x3b   : > { %212 = vst [vmem:[#allocation5 + $0x10] sm:$0xff] %v207_v15 }
  0x3c PF: > { %v373_v16 = vld [vmem:[%s692_s9 + $0x18] sm:$0xff]  ;;  %v216_v17 = vmul.f32 0.7, %v207_v15  ;;  %220 = sbr.rel (%p370_p1) target bundleno = 66 (0x42), region = 44 }
  0x3d   : > { %v215_v18 = vmul.f32 0.3, %v373_v16 }
  0x3f   : > { %v217_v19 = vadd.f32 %v216_v17, %v215_v18 }
  0x41   : > { %222 = vst [vmem:[#allocation5 + $0x18] sm:$0xff] %v217_v19 }
  0x42 PF: > { %v375_v20 = vld [vmem:[%s692_s9 + $0x20] sm:$0xff]  ;;  %v226_v21 = vmul.f32 0.7, %v217_v19  ;;  %230 = sbr.rel (%p370_p1) target bundleno = 72 (0x48), region = 48 }
  0x43   : > { %v225_v22 = vmul.f32 0.3, %v375_v20 }
  0x45   : > { %v227_v23 = vadd.f32 %v226_v21, %v225_v22 }
  0x47   : > { %231 = vst [vmem:[#allocation5] sm:$0xff] %v227_v23 }
  0x48 PF: > { %v377_v24 = vld [vmem:[%s692_s9 + $0x28] sm:$0xff]  ;;  %v235_v25 = vmul.f32 0.7, %v227_v23  ;;  %v378_v26 = vld [vmem:[%s692_s9 + $0x30] sm:$0xff]  ;;  %v379_v30 = vld [vmem:[%s692_s9 + $0x38] sm:$0xff] }
  0x49   : > { %v234_v27 = vmul.f32 0.3, %v377_v24  ;;  %v239_v29 = vmul.f32 0.3, %v378_v26  ;;  %v244_v33 = vmul.f32 0.3, %v379_v30 }
  0x4b   : > { %v236_v28 = vadd.f32 %v235_v25, %v234_v27 }
  0x4d   : > { %v240_v31 = vmul.f32 0.7, %v236_v28 }
  0x4f   : > { %v241_v32 = vadd.f32 %v240_v31, %v239_v29  ;;  %249 = sbr.rel (%p370_p1) target bundleno = 85 (0x55), region = 52 }
  0x51   : > { %v245_v34 = vmul.f32 0.7, %v241_v32 }
  0x53   : > { %v246_v35 = vadd.f32 %v245_v34, %v244_v33 }
  0x54   : > { %250 = vst [vmem:[#allocation6] sm:$0xff] %v227_v23 }
  0x55 PF: > { %p381_p2 = scmp.ge.s32.totalorder %s598_s12, 2 }
  0x57   : > { %254 = sbr.rel (%p381_p2) target bundleno = 93 (0x5d), region = 56 }
  0x5c   : > { %255 = vst [vmem:[#allocation6] sm:$0xff] %v246_v35 }
  0x5d PF: > { %p723_p3 = scmp.eq.s32.totalorder %s360_s15, 2  ;;  %s265_s22 = sshll.u32 %s764_s1, 4  ;;  %s266_s22 = int_to_ptr.hbm [resolvable:$true] %s265_s22 }
  0x5e   : > { %s610_s23 = smov [#allocation5]   ;;  %s611_s12 = smov 128  }
  0x5f   : > { %s263_s24 = sshll.u32 %s610_s23, 4  ;;  %s612_s25 = smov 8   ;;  %s264_s24 = int_to_ptr.vmem [resolvable:$true] %s263_s24 }
  0x60   : > { %392 = dma.vmem_to_hbm [thread:$0]  (%p723_p3), %s264_s24, 512, %s266_s22, [#allocation4], %s611_s12, %s611_s12, %s612_s25  }
  0x61   : > { %s613_s26 = smov [#allocation6]   ;;  %s282_s29 = sshll.u32 %s765_s2, 4  ;;  %s283_s29 = int_to_ptr.hbm [resolvable:$true] %s282_s29 }
  0x62   : > { %s280_s15 = sshll.u32 %s613_s26, 4  ;;  %s281_s15 = int_to_ptr.vmem [resolvable:$true] %s280_s15 }
  0x63   : > { %394 = dma.vmem_to_hbm [thread:$0]  (%p723_p3), %s281_s15, 128, %s283_s29, [#allocation7]  }
  0x64   : > { %577 = dma.done.wait (%p723_p3), [#allocation4], 512  }
  0x65   : > { %579 = vsyncadd (%p723_p3), [#allocation4], 4294966784 }
  0x66   : > { %581 = dma.done.wait (%p723_p3), [#allocation7], 128  }
  0x67   : > { %583 = vsyncadd (%p723_p3), [#allocation7], 4294967168 }
  0x68 PF: > { %s18_s14 = sadd.s32 1, %s606_s14   ;;  %s769_s9 = smov %s590_s10 }
  0x69   : > { %p15_p4 = scmp.ge.s32.totalorder %s18_s14, 5   ;;  %s770_s10 = smov %s594_s11 }
  0x6a   : > { %s771_s11 = smov %s680_s21  ;;  %s772_s12 = smov %s602_s13 }
  0x6b   : > { %s773_s13 = smov %s775_s16  ;;  %17 = sbr.rel (!%p15_p4) target bundleno = 6 (0x6), region = 109 }
  0x70   :  { %301 = vsyncpa [#allocation3], 1 }
  0x71   :  { %303 = vsyncpa [#allocation3 + $0x1], 1 }
  0x72   :  { %304 = vsyncpa [#allocation4], 1 }
  0x73   :  { %306 = vsyncpa [#allocation4 + $0x1], 1 }
  0x74   :  { %307 = vsyncpa [#allocation7], 1 }

</bundles_post_ra>
